<compile_context>
chip_gen: v7x
topology: tpu7x:2x2x1
jax: 0.10.0
libtpu: 0.0.40
codegen_flags: <defaults>
</compile_context>

<pallas_src>
import jax
import jax.numpy as jnp
from jax.experimental import pallas as pl
from jax.experimental.pallas import tpu as pltpu


# ~2 MiB per tile: with double-buffered input + output that is <= 8 MiB of
# resident VMEM, safe on v5e (16 MiB scoped default), v6e (32 MiB) and v7x.
_TILE_BYTES = 2 * 1024 * 1024
_MAX_COLS = 2048  # keep the lane-dense column width bounded


def _flatten_copy_kernel(x_ref, o_ref):
    # Identity copy of the current (row_tile, cols) tile.
    # TODO(synk): fuse the downstream consumer (e.g. the following matmul)
    # here so this memory traffic does useful work.
    o_ref[...] = x_ref[...]


def _sublane_multiple(itemsize):
    # Sublane packing factor: f32 -> 8, bf16 -> 16, int8/fp8 -> 32.
    return max(8, 32 // itemsize)


def _choose_layout(total, itemsize):
    """Pick a lane/sublane-dense 2D slab (r, c) holding `total` elements plus a
    row-tile `tr` that divides r, is sublane-aligned and fits the byte budget.
    Returns None if no dense layout exists (caller falls back to a single
    full-array block)."""
    sub = _sublane_multiple(itemsize)
    best_c = None
    c = 128
    while c <= min(total, _MAX_COLS):
        if total % c == 0 and (total // c) % sub == 0:
            best_c = c  # prefer the widest lane-dense column width
        c += 128
    if best_c is None:
        return None
    r = total // best_c
    max_tr = max(sub, (_TILE_BYTES // (best_c * itemsize)) // sub * sub)
    tr = sub
    t = sub
    while t <= min(r, max_tr):
        if r % t == 0:
            tr = t  # largest divisor of r that is a multiple of `sub` & fits budget
        t += sub
    return r, best_c, tr


def flatten_forward(x, out_features):
    """Equivalent of torch Flatten(out_features).forward(x) == x.view(-1, D)."""
    total = 1
    for s in x.shape:
        total *= s
    assert total % out_features == 0, "input size must be divisible by out_features"
    rows = total // out_features
    itemsize = jnp.dtype(x.dtype).itemsize
    cost = pl.CostEstimate(
        flops=0, transcendentals=0, bytes_accessed=2 * total * itemsize
    )

    layout = _choose_layout(total, itemsize)

    if layout is None:
        # Fallback for shapes with no lane-dense factorization: single
        # full-array block (block == full array dims satisfies the (8,128) rule).
        x2d = jnp.reshape(x, (rows, out_features))
        return pl.pallas_call(
            _flatten_copy_kernel,
            out_shape=jax.ShapeDtypeStruct((rows, out_features), x.dtype),
            grid_spec=pltpu.PrefetchScalarGridSpec(
                num_scalar_prefetch=0,
                grid=(1,),
                in_specs=[pl.BlockSpec((rows, out_features), lambda i: (0, 0))],
                out_specs=pl.BlockSpec((rows, out_features), lambda i: (0, 0)),
            ),
            compiler_params=pltpu.CompilerParams(
                dimension_semantics=("arbitrary",)
            ),
            cost_estimate=cost,
        )(x2d)

    r, c, tr = layout
    # Layout plumbing: present the same flat element order as a dense slab.
    # Row-major reshape, so flat ordering (and hence .view semantics) is kept.
    x_slab = jnp.reshape(x, (r, c))

    out_slab = pl.pallas_call(
        _flatten_copy_kernel,
        out_shape=jax.ShapeDtypeStruct((r, c), x.dtype),
        grid_spec=pltpu.PrefetchScalarGridSpec(
            num_scalar_prefetch=0,
            grid=(r // tr,),
            in_specs=[pl.BlockSpec((tr, c), lambda i: (i, 0))],
            out_specs=pl.BlockSpec((tr, c), lambda i: (i, 0)),
        ),
        compiler_params=pltpu.CompilerParams(
            dimension_semantics=("parallel",)
        ),
        cost_estimate=cost,
    )(x_slab)

    # Metadata-only reshape back to the PyTorch-facing (rows, out_features).
    return jnp.reshape(out_slab, (rows, out_features))


if __name__ == "__main__":
    key = jax.random.PRNGKey(0)
    # NCHW input, e.g. feature maps from a conv stack: batch=2, C=4, H=W=16.
    B, C, H, W = 2, 4, 16, 16
    out_features = C * H * W  # Flatten(out_features=1024)

    x = jax.random.normal(key, (B, C, H, W), dtype=jnp.float32)

    y = flatten_forward(x, out_features)
    y = jax.block_until_ready(y)

    # Correctness check against the reference semantics (plain reshape,
    # identical to contiguous torch .view(-1, out_features)).
    ref = jnp.reshape(x, (-1, out_features))
    assert y.shape == (B, out_features)
    assert y.dtype == x.dtype
    assert bool(jnp.all(y == ref))

    print("KERNEL_OK")
</pallas_src>

<mosaic_0001>
module attributes {stable_mosaic.version = 11 : i64} {
  func.func @_flatten_copy_kernel(%arg0: i32, %arg1: memref<8x256xf32, #tpu.memory_space<vmem>>, %arg2: memref<8x256xf32, #tpu.memory_space<vmem>>) attributes {dimension_semantics = [#tpu.dimension_semantics<parallel>], iteration_bounds = array<i64: 1>, scalar_prefetch = 0 : i64, scratch_operands = 0 : i64, tpu.core_type = #tpu.core_type<tc>, window_params = [{transform_indices = @transform_0, window_bounds = array<i64: 8, 256>}, {transform_indices = @transform_1, window_bounds = array<i64: 8, 256>}]} {
    %c0 = arith.constant 0 : index
    %c0_0 = arith.constant 0 : index
    %0 = vector.load %arg1[%c0, %c0_0] : memref<8x256xf32, #tpu.memory_space<vmem>>, vector<8x256xf32>
    %c0_1 = arith.constant 0 : index
    %c0_2 = arith.constant 0 : index
    %1 = vector.load %arg2[%c0_1, %c0_2] : memref<8x256xf32, #tpu.memory_space<vmem>>, vector<8x256xf32>
    tpu.vector_store %arg2[%c0_1, %c0_2], %0 {strides = array<i32>} : memref<8x256xf32, #tpu.memory_space<vmem>>, vector<8x256xf32>,
    return
  }
  func.func @transform_0(%arg0: i32) -> (i32, i32) {
    %c0_i32 = arith.constant 0 : i32
    %c0_i32_0 = arith.constant 0 : i32
    return %arg0, %c0_i32 : i32, i32
  }
  func.func @transform_1(%arg0: i32) -> (i32, i32) {
    %c0_i32 = arith.constant 0 : i32
    %c0_i32_0 = arith.constant 0 : i32
    return %arg0, %c0_i32 : i32, i32
  }
}

</mosaic_0001>

<bundles_post_ra>
// kernel: tpu_custom_call.1
= control target key start
LH: loop header
LB: loop body
LE: loop exit
PB: predicated region body
PF: predicated region fallthrough
CT: control target
= control target key end

     0   :  { %6 = vsyncpa [#allocation3], 0  ;;  %s126_s0 = inlined_call_operand.hbm [shape: f32[8,256], index: 0, kind: input, shape index: {}]   ;;  %s127_s1 = inlined_call_operand.hbm [shape: f32[8,256], index: 1, kind: output, shape index: {}]  }
   0x1   :  { %7 = vsyncpa [#allocation4], 0  ;;  %s90_s6 = smov [#allocation2]   ;;  %s42_s10 = scalar_lea.hbm %s126_s0, 256 }
   0x2   :  { %s14_s7 = sshll.u32 %s90_s6, 4  ;;  %p43_p0 = scmp.ne.s32.totalorder %s126_s0, %s42_s10  ;;  %s15_s7 = int_to_ptr.vmem [resolvable:$true] %s14_s7 }
   0x3   :  { %p46_p1 = scmp.lt.u32.totalorder %s42_s10, %s126_s0 }
   0x5   :  { %p48_p2 = pnand %p46_p1, %p43_p0 }
   0x7   :  { %51 = shalt.err (!%p48_p2)
}
   0x8   :  { %s52_s15 = scalar_lea.vmem %s15_s7, 256  ;;  %p57_p4 = scmp.lt.s32.totalorder %s15_s7, %s15_s7 }
   0x9   :  { %p53_p3 = scmp.ne.s32.totalorder %s15_s7, %s52_s15  ;;  %p58_p5 = scmp.lt.s32.totalorder %s52_s15, %s52_s15 }
   0xb   :  { %p59_p6 = por %p58_p5, %p57_p4 }
   0xd   :  { %p60_p7 = pnand %p59_p6, %p53_p3 }
   0xf   :  { %63 = shalt.err (!%p60_p7)
}
  0x10   :  { %17 = dma.hbm_to_vmem [thread:$0]  %s126_s0, 256, %s15_s7, [#allocation3]  }
  0x11   :  { %86 = dma.done.wait [#allocation3], 256  }
  0x12   :  { %87 = vsyncadd [#allocation3], 4294967040  ;;  %s91_s18 = smov [#allocation5]   ;;  %v21_v0 = vld [vmem:[#allocation2] sm:$0xff]  ;;  %v22_v1 = vld [vmem:[#allocation2 + $0x8] sm:$0xff] }
  0x13   :  { %s31_s19 = sshll.u32 %s91_s18, 4  ;;  %23 = vst [vmem:[#allocation5] sm:$0xff] %v21_v0  ;;  %24 = vst [vmem:[#allocation5 + $0x8] sm:$0xff] %v22_v1  ;;  %s32_s19 = int_to_ptr.vmem [resolvable:$true] %s31_s19 }
  0x14   :  { %s64_s20 = scalar_lea.vmem %s32_s19, 256  ;;  %p69_p9 = scmp.lt.s32.totalorder %s32_s19, %s32_s19 }
  0x15   :  { %p65_p8 = scmp.ne.s32.totalorder %s32_s19, %s64_s20  ;;  %p70_p10 = scmp.lt.s32.totalorder %s64_s20, %s64_s20 }
  0x17   :  { %p71_p11 = por %p70_p10, %p69_p9 }
  0x19   :  { %p72_p12 = pnand %p71_p11, %p65_p8 }
  0x1b   :  { %75 = shalt.err (!%p72_p12)
}
  0x1c   :  { %s76_s0 = scalar_lea.hbm %s127_s1, 256 }
  0x1d   :  { %p77_p13 = scmp.ne.s32.totalorder %s127_s1, %s76_s0  ;;  %p80_p0 = scmp.lt.u32.totalorder %s76_s0, %s127_s1 }
  0x1f   :  { %p82_p1 = pnand %p80_p0, %p77_p13 }
  0x21   :  { %85 = shalt.err (!%p82_p1)
}
  0x22   :  { %34 = dma.vmem_to_hbm [thread:$0]  %s32_s19, 256, %s127_s1, [#allocation4]  }
  0x23   :  { %88 = dma.done.wait [#allocation4], 256  }
  0x24   :  { %89 = vsyncadd [#allocation4], 4294967040 }
  0x25   :  { %38 = vsyncpa [#allocation3], 1 }
  0x26   :  { %39 = vsyncpa [#allocation4], 1 }

</bundles_post_ra>
